<compile_context>
chip_gen: v7x
topology: tpu7x:2x2x1
jax: 0.10.0
libtpu: 0.0.40
codegen_flags: <defaults>
</compile_context>

<pallas_src>
import functools
import math

import jax
import jax.numpy as jnp
from jax.experimental import pallas as pl
from jax.experimental.pallas import tpu as pltpu


def _conv1x1_kernel(x_ref, w_ref, b_ref, o_ref, *, use_non_lin, use_mxu):
    # x_ref: (C_in, tile_L)  w_ref: (C_out, C_in)  b_ref: (C_out, 1)
    # o_ref: (C_out, tile_L)
    x = x_ref[...]
    w = w_ref[...]
    b = b_ref[...].astype(jnp.float32)
    c_out, c_in = w.shape
    tile_l = x.shape[-1]

    if use_mxu:
        # Native-dtype operands straight into the MXU, f32 accumulation.
        y = jnp.dot(w, x, preferred_element_type=jnp.float32) + b
    else:
        # Small channel counts: a (C_out, C_in) x (C_in, tile_L) matmul would
        # use <1% of a 256x256 MXU -> do a VPU broadcast-MAC over C_in.
        acc = jnp.broadcast_to(b, (c_out, tile_l))
        for ci in range(c_in):  # c_in < 64 here -> cheap static unroll
            acc = acc + (w[:, ci:ci + 1].astype(jnp.float32)
                         * x[ci:ci + 1, :].astype(jnp.float32))
        y = acc

    if use_non_lin:
        # Exact GELU: matches torch.nn.GELU(approximate='none').
        y = 0.5 * y * (1.0 + jax.lax.erf(y * jnp.float32(1.0 / math.sqrt(2.0))))

    o_ref[...] = y.astype(o_ref.dtype)


def _pick_tile_l(L, c_in, c_out, itemsize, budget_bytes=24 << 20):
    """Largest L tile whose double-buffered in/out tiles + weights fit budget."""
    fixed = (c_out * c_in + c_out) * 4            # resident weight + bias
    per_col = 2 * (c_in + c_out) * itemsize       # 2x (in + out) buffers / column
    max_cols = max(128, (budget_bytes - fixed) // per_col)
    if L <= max_cols:
        return L                                  # full-dim block: always layout-legal
    # Lane-aligned tile (multiple of 128); ragged tail handled by masked writeback.
    return int(min((max_cols // 128) * 128, 2048))


def conv1d_nonlin(x, weight, bias, *, use_non_lin=True):
    """x: (N, C_in, L). weight: (C_out, C_in, 1). bias: (C_out,).

    Returns (N, C_out, L), equivalent to
    nn.GELU()(nn.Conv1d(C_in, C_out, 1)(x)) (or just the conv if
    use_non_lin=False).
    """
    N, C_in, L = x.shape
    C_out = weight.shape[0]

    w2d = weight[:, :, 0]                 # (C_out, C_in): dot(w, x) needs no transpose
    b2d = bias.reshape(C_out, 1)          # lane-broadcastable bias

    itemsize = jnp.dtype(x.dtype).itemsize
    tile_l = _pick_tile_l(L, C_in, C_out, itemsize)
    n_l = pl.cdiv(L, tile_l)

    use_mxu = (C_in >= 64) or (C_out >= 64)
    kernel = functools.partial(_conv1x1_kernel,
                               use_non_lin=use_non_lin, use_mxu=use_mxu)

    # Explicit VMEM budget: double-buffered x/out tiles + resident weight/bias
    # + headroom; capped at 48 MiB so it is valid on v7x (64 MiB physical).
    need = (2 * (C_in + C_out) * tile_l * itemsize
            + (C_out * C_in + C_out) * 4 + (2 << 20))
    vmem_limit = int(min(max(need, 16 << 20), 48 << 20))

    cost = pl.CostEstimate(
        flops=2 * N * L * C_in * C_out,
        transcendentals=(N * L * C_out) if use_non_lin else 0,
        bytes_accessed=(N * L * (C_in + C_out) + C_out * (C_in + 1)) * itemsize,
    )

    return pl.pallas_call(
        kernel,
        out_shape=jax.ShapeDtypeStruct((N, C_out, L), x.dtype),
        grid=(N, n_l),
        in_specs=[
            pl.BlockSpec((None, C_in, tile_l), lambda n, l: (n, 0, l)),
            pl.BlockSpec((C_out, C_in), lambda n, l: (0, 0)),   # resident weight
            pl.BlockSpec((C_out, 1), lambda n, l: (0, 0)),      # resident bias
        ],
        out_specs=pl.BlockSpec((None, C_out, tile_l), lambda n, l: (n, 0, l)),
        compiler_params=pltpu.CompilerParams(
            dimension_semantics=("parallel", "parallel"),
            vmem_limit_bytes=vmem_limit),
        cost_estimate=cost,
    )(x, w2d, b2d)


if __name__ == "__main__":
    key = jax.random.PRNGKey(0)
    kx, kw, kb, kx2, kw2, kb2 = jax.random.split(key, 6)

    # --- Small-channel test (VPU path), matches the module's default usage ---
    N, C_in, C_out, L = 2, 4, 8, 16
    bound = 1.0 / math.sqrt(C_in * 1)   # PyTorch Conv1d default init bound
    weight = jax.random.uniform(kw, (C_out, C_in, 1), jnp.float32, -bound, bound)
    bias = jax.random.uniform(kb, (C_out,), jnp.float32, -bound, bound)
    x = jax.random.normal(kx, (N, C_in, L), jnp.float32)

    out = jax.block_until_ready(conv1d_nonlin(x, weight, bias, use_non_lin=True))
    ref_lin = jnp.einsum("ncl,oc->nol", x, weight[:, :, 0]) + bias[None, :, None]
    ref = 0.5 * ref_lin * (1.0 + jax.lax.erf(ref_lin / jnp.sqrt(2.0)))
    assert out.shape == (N, C_out, L)
    assert jnp.allclose(out, ref, atol=1e-5, rtol=1e-5)

    # Linear-only path (use_non_lin=False)
    out_lin = jax.block_until_ready(conv1d_nonlin(x, weight, bias, use_non_lin=False))
    assert jnp.allclose(out_lin, ref_lin, atol=1e-5, rtol=1e-5)

    # --- Larger-channel test (MXU path, lane-dense 128-wide L tiles) ---
    N2, Ci2, Co2, L2 = 1, 128, 128, 256
    bound2 = 1.0 / math.sqrt(Ci2)
    weight2 = jax.random.uniform(kw2, (Co2, Ci2, 1), jnp.float32, -bound2, bound2)
    bias2 = jax.random.uniform(kb2, (Co2,), jnp.float32, -bound2, bound2)
    x2 = jax.random.normal(kx2, (N2, Ci2, L2), jnp.float32)

    out2 = jax.block_until_ready(conv1d_nonlin(x2, weight2, bias2, use_non_lin=True))
    ref2_lin = jnp.einsum("ncl,oc->nol", x2, weight2[:, :, 0]) + bias2[None, :, None]
    ref2 = 0.5 * ref2_lin * (1.0 + jax.lax.erf(ref2_lin / jnp.sqrt(2.0)))
    assert out2.shape == (N2, Co2, L2)
    assert jnp.allclose(out2, ref2, atol=1e-4, rtol=1e-4)

    print("KERNEL_OK")
</pallas_src>

<mosaic_0001>
module attributes {stable_mosaic.version = 11 : i64} {
  func.func @_conv1x1_kernel(%arg0: i32, %arg1: i32, %arg2: memref<1x4x16xf32, #tpu.memory_space<vmem>>, %arg3: memref<8x4xf32, #tpu.memory_space<vmem>>, %arg4: memref<8x1xf32, #tpu.memory_space<vmem>>, %arg5: memref<1x8x16xf32, #tpu.memory_space<vmem>>) attributes {dimension_semantics = [#tpu.dimension_semantics<parallel>, #tpu.dimension_semantics<parallel>], iteration_bounds = array<i64: 2, 1>, scalar_prefetch = 0 : i64, scratch_operands = 0 : i64, tpu.core_type = #tpu.core_type<tc>, window_params = [{transform_indices = @transform_0, window_bounds = array<i64: 1, 4, 16>}, {pipeline_mode = #tpu.pipeline_mode<synchronous>, transform_indices = @transform_1, window_bounds = array<i64: 8, 4>}, {pipeline_mode = #tpu.pipeline_mode<synchronous>, transform_indices = @transform_2, window_bounds = array<i64: 8, 1>}, {transform_indices = @transform_3, window_bounds = array<i64: 1, 8, 16>}]} {
    %c0 = arith.constant 0 : index
    %c0_0 = arith.constant 0 : index
    %c0_1 = arith.constant 0 : index
    %0 = vector.load %arg2[%c0, %c0_0, %c0_1] : memref<1x4x16xf32, #tpu.memory_space<vmem>>, vector<1x4x16xf32>
    %1 = vector.shape_cast %0 : vector<1x4x16xf32> to vector<4x16xf32>
    %c0_2 = arith.constant 0 : index
    %c0_3 = arith.constant 0 : index
    %2 = vector.load %arg3[%c0_2, %c0_3] : memref<8x4xf32, #tpu.memory_space<vmem>>, vector<8x4xf32>
    %c0_4 = arith.constant 0 : index
    %c0_5 = arith.constant 0 : index
    %3 = vector.load %arg4[%c0_4, %c0_5] : memref<8x1xf32, #tpu.memory_space<vmem>>, vector<8x1xf32>
    %4 = vector.shape_cast %3 : vector<8x1xf32> to vector<8x1xf32>
    %5 = vector.broadcast %4 : vector<8x1xf32> to vector<8x16xf32>
    %6 = vector.extract_strided_slice %2 {offsets = [0, 0], sizes = [8, 1], strides = [1, 1]} : vector<8x4xf32> to vector<8x1xf32>
    %7 = vector.extract_strided_slice %1 {offsets = [0, 0], sizes = [1, 16], strides = [1, 1]} : vector<4x16xf32> to vector<1x16xf32>
    %8 = vector.broadcast %6 : vector<8x1xf32> to vector<8x16xf32>
    %9 = vector.broadcast %7 : vector<1x16xf32> to vector<8x16xf32>
    %10 = arith.mulf %8, %9 : vector<8x16xf32>
    %11 = arith.addf %5, %10 : vector<8x16xf32>
    %12 = vector.extract_strided_slice %2 {offsets = [0, 1], sizes = [8, 1], strides = [1, 1]} : vector<8x4xf32> to vector<8x1xf32>
    %13 = vector.extract_strided_slice %1 {offsets = [1, 0], sizes = [1, 16], strides = [1, 1]} : vector<4x16xf32> to vector<1x16xf32>
    %14 = vector.broadcast %12 : vector<8x1xf32> to vector<8x16xf32>
    %15 = vector.broadcast %13 : vector<1x16xf32> to vector<8x16xf32>
    %16 = arith.mulf %14, %15 : vector<8x16xf32>
    %17 = arith.addf %11, %16 : vector<8x16xf32>
    %18 = vector.extract_strided_slice %2 {offsets = [0, 2], sizes = [8, 1], strides = [1, 1]} : vector<8x4xf32> to vector<8x1xf32>
    %19 = vector.extract_strided_slice %1 {offsets = [2, 0], sizes = [1, 16], strides = [1, 1]} : vector<4x16xf32> to vector<1x16xf32>
    %20 = vector.broadcast %18 : vector<8x1xf32> to vector<8x16xf32>
    %21 = vector.broadcast %19 : vector<1x16xf32> to vector<8x16xf32>
    %22 = arith.mulf %20, %21 : vector<8x16xf32>
    %23 = arith.addf %17, %22 : vector<8x16xf32>
    %24 = vector.extract_strided_slice %2 {offsets = [0, 3], sizes = [8, 1], strides = [1, 1]} : vector<8x4xf32> to vector<8x1xf32>
    %25 = vector.extract_strided_slice %1 {offsets = [3, 0], sizes = [1, 16], strides = [1, 1]} : vector<4x16xf32> to vector<1x16xf32>
    %26 = vector.broadcast %24 : vector<8x1xf32> to vector<8x16xf32>
    %27 = vector.broadcast %25 : vector<1x16xf32> to vector<8x16xf32>
    %28 = arith.mulf %26, %27 : vector<8x16xf32>
    %29 = arith.addf %23, %28 : vector<8x16xf32>
    %cst = arith.constant 5.000000e-01 : f32
    %30 = vector.broadcast %cst : f32 to vector<8x16xf32>
    %31 = arith.mulf %30, %29 : vector<8x16xf32>
    %cst_6 = arith.constant 0.707106769 : f32
    %32 = vector.broadcast %cst_6 : f32 to vector<8x16xf32>
    %33 = arith.mulf %29, %32 : vector<8x16xf32>
    %34 = math.erf %33 : vector<8x16xf32>
    %cst_7 = arith.constant 1.000000e+00 : f32
    %35 = vector.broadcast %cst_7 : f32 to vector<8x16xf32>
    %36 = arith.addf %35, %34 : vector<8x16xf32>
    %37 = arith.mulf %31, %36 : vector<8x16xf32>
    %c0_8 = arith.constant 0 : index
    %c0_9 = arith.constant 0 : index
    %c0_10 = arith.constant 0 : index
    %38 = vector.load %arg5[%c0_8, %c0_9, %c0_10] : memref<1x8x16xf32, #tpu.memory_space<vmem>>, vector<1x8x16xf32>
    %39 = vector.shape_cast %38 : vector<1x8x16xf32> to vector<8x16xf32>
    %40 = vector.shape_cast %37 : vector<8x16xf32> to vector<1x8x16xf32>
    tpu.vector_store %arg5[%c0_8, %c0_9, %c0_10], %40 {strides = array<i32>} : memref<1x8x16xf32, #tpu.memory_space<vmem>>, vector<1x8x16xf32>,
    return
  }
  func.func @transform_0(%arg0: i32, %arg1: i32) -> (i32, i32, i32) {
    %c0_i32 = arith.constant 0 : i32
    %c0_i32_0 = arith.constant 0 : i32
    return %arg0, %c0_i32, %arg1 : i32, i32, i32
  }
  func.func @transform_1(%arg0: i32, %arg1: i32) -> (i32, i32) {
    %c0_i32 = arith.constant 0 : i32
    %c0_i32_0 = arith.constant 0 : i32
    %c0_i32_1 = arith.constant 0 : i32
    return %c0_i32, %c0_i32_0 : i32, i32
  }
  func.func @transform_2(%arg0: i32, %arg1: i32) -> (i32, i32) {
    %c0_i32 = arith.constant 0 : i32
    %c0_i32_0 = arith.constant 0 : i32
    %c0_i32_1 = arith.constant 0 : i32
    return %c0_i32, %c0_i32_0 : i32, i32
  }
  func.func @transform_3(%arg0: i32, %arg1: i32) -> (i32, i32, i32) {
    %c0_i32 = arith.constant 0 : i32
    %c0_i32_0 = arith.constant 0 : i32
    return %arg0, %c0_i32, %arg1 : i32, i32, i32
  }
}

</mosaic_0001>

<bundles_post_ra>
// kernel: tpu_custom_call.1
= control target key start
LH: loop header
LB: loop body
LE: loop exit
PB: predicated region body
PF: predicated region fallthrough
CT: control target
= control target key end

     0   :  { %8 = vsyncpa [#allocation3], 0  ;;  %s632_s0 = inlined_call_operand.vmem [shape: f32[2,4,16], index: 0, kind: input, shape index: {}]   ;;  %s633_s1 = inlined_call_operand.vmem [shape: f32[8,4], index: 1, kind: input, shape index: {}]   ;;  %s634_s2 = inlined_call_operand.vmem [shape: f32[8,1], index: 2, kind: input, shape index: {}]   ;;  %s635_s3 = inlined_call_operand.hbm [shape: f32[2,8,16], index: 3, kind: output, shape index: {}]  }
   0x1   :  { %10 = vsyncpa [#allocation3 + $0x1], 0  ;;  %s514_s12 = smov 0   ;;  %s516_s13 = smov 0  }
   0x2   :  { %s518_s14 = smov 0   ;;  %s520_s15 = smov 0  }
   0x3   :  { %s522_s16 = smov 0   ;;  %s524_s17 = smov 0  }
   0x4 LB: > { %s333_s18 = sadd.s32 4294967295, %s487_s17   ;;  %s334_s19 = sadd.s32 4294967294, %s487_s17   ;;  %s487_s17 = sphi %s524_s17, %s16_s17   ;;  %s483_s16 = sphi %s522_s16, %s642_s16   ;;  %s479_s15 = sphi %s520_s15, %s641_s15   ;;  %s475_s14 = sphi %s518_s14, %s640_s14   ;;  %s471_s13 = sphi %s516_s13, %s639_s13   ;;  %s467_s12 = sphi %s514_s12, %s638_s12  }
   0x5   : > { %s28_s20 = sadd.s32 1, %s483_s16  ;;  %s107_s21 = sadd.s32 1, %s475_s14 }
   0x6   : > { %p30_p0 = scmp.ge.s32.totalorder %s28_s20, 2  ;;  %p117_p1 = scmp.ne.s32.totalorder %s475_s14, %s471_s13 }
   0x7   : > { %p118_p2 = scmp.eq.s32.totalorder %s333_s18, 1  ;;  %p123_p3 = scmp.ne.s32.totalorder %s471_s13, %s467_s12 }
   0x8   : > { %s644_s20 = smov (%p30_p0, %s28_s20), 0  ;;  %p124_p5 = scmp.eq.s32.totalorder %s334_s19, 1 }
   0x9   : > { %p554_p4 = por %p118_p2, %p117_p1  ;;  %s102_s23 = ssub.s32 %s483_s16, %s644_s20 }
   0xa   : > { %p337_p6 = scmp.ge.s32.totalorder %s487_s17, 1  ;;  %p105_p7 = scmp.eq.s32.totalorder %s102_s23, 0 }
   0xb   : > { %p561_p8 = por %p124_p5, %p123_p3  ;;  %p158_p9 = scmp.lt.s32.totalorder %s487_s17, 3 }
   0xc   : > { %s567_s25 = scalar_select %p105_p7, %s475_s14, %s107_s21  }
   0xd   : > { %p159_p10 = pnand %p337_p6, %p158_p9 }
   0xe   : > { %v192_v0 = vld [vmem:[%s633_s1] sm:$0xff] (!%p159_p10)  ;;  %v489_v1 = vmov (!%p159_p10), 0   ;;  %v490_v2 = vmov (!%p159_p10), 1   ;;  %v491_v4 = vmov (!%p159_p10), 2   ;;  %v492_v5 = vmov (!%p159_p10), 3   ;;  %p184_p11 = scmp.lt.s32.totalorder (!%p159_p10), %s479_s15, 1 }
   0xf   : > { %162 = sbr.rel (%p159_p10) target bundleno = 188 (0xbc), region = 32  ;;  %403 = vset.pattern.permute.xlu0 (!%p159_p10), %v489_v1  ;;  %404 = vset.pattern.permute.xlu1 (!%p159_p10), %v490_v2  ;;  %v193_v3 = vld [vmem:[%s634_s2] sm:$0xff] (!%p159_p10)  ;;  %v204_v6 = vlaneseq (!%p159_p10)  ;;  %s181_s8 = sand.u32 (!%p159_p10), 1, %s471_s13   ;;  %vm245_vm0 = vcmask (!%p159_p10), 130048  }
  0x10   : > { %201 = vperm.xlu0 (!%p159_p10), %403, %v192_v0   ;;  %211 = vperm.xlu1 (!%p159_p10), %404, %v192_v0   ;;  %s338_s9 = sshll.u32 (!%p159_p10), %s181_s8, 3  ;;  %s341_s10 = sshll.u32 (!%p159_p10), %s479_s15, 7 }
  0x11   : > { %v205_v7 = vshrl.u32 (!%p159_p10), %v204_v6, 7  ;;  %s183_s11 = scalar_lea.vmem (!%p159_p10), [#allocation2], %s338_s9  ;;  %s585_s23 = scalar_lea.hbm (!%p159_p10), %s635_s3, %s341_s10 }
  0x12   : > { %s262_s18 = sshll.u32 (!%p159_p10), %s183_s11, 4  ;;  %s248_s26 = scalar_lea.sflag (!%p159_p10), [#allocation3], %s181_s8  ;;  %s587_s18 = int_to_ptr.vmem [resolvable:$true] %s262_s18 }
  0x13   : > { %v206_v8 = vsub.s32 (!%p159_p10), 0, %v205_v7  ;;  %v216_v10 = vsub.s32 (!%p159_p10), 1, %v205_v7  ;;  %v226_v11 = vsub.s32 (!%p159_p10), 2, %v205_v7  ;;  %v236_v17 = vsub.s32 (!%p159_p10), 3, %v205_v7  ;;  %s409_s27 = scalar_lea.vmem (!%p159_p10), %s587_s18, 128 }
  0x14   : > { %196 = vperm.xlu0 (!%p159_p10), %403, %v193_v3   ;;  %405 = vset.pattern.permute.xlu1 (!%p159_p10), %v491_v4  ;;  %p410_p12 = scmp.ne.s32.totalorder (!%p159_p10), %s587_s18, %s409_s27 }
  0x15   : > { %221 = vperm.xlu1 (!%p159_p10), %405, %v192_v0  }
  0x16   : > { %s185_s30 = scalar_select %p184_p11, %s479_s15, 1 }
  0x17   : > { %p411_p13 = pnand %p410_p12, %p554_p4  ;;  %s493_s15 = smov [#allocation2]  }
  0x18   : > { %406 = vset.pattern.permute.xlu0 %v492_v5  ;;  %s339_s4 = sshll.u32 %s185_s30, 2  ;;  %s413_s28 = sshll.u32 %s493_s15, 4  ;;  %s414_s28 = int_to_ptr.vmem [resolvable:$false] %s413_s28 }
  0x19   : > { %231 = vperm.xlu0 %406, %v192_v0   ;;  %s190_s7 = scalar_lea.vmem %s632_s0, %s339_s4  ;;  %p412_p0 = pneg %p411_p13 }
  0x1a   : > { %v191_v9 = vld [vmem:[%s190_s7] sm:$0xf]  ;;  %s415_s29 = scalar_lea.vmem %s414_s28, 256  ;;  %p416_p1 = scmp.lt.s32.totalorder %s587_s18, %s414_s28 }
  0x1b   : > { %v207_v12 = vrot.slane %v191_v9, %v206_v8  ;;  %v217_v15 = vrot.slane %v191_v9, %v216_v10  ;;  %v227_v16 = vrot.slane %v191_v9, %v226_v11  ;;  %v237_v24 = vrot.slane %v191_v9, %v236_v17  ;;  %p417_p2 = scmp.lt.s32.totalorder %s415_s29, %s409_s27 }
  0x1d   : > { %p418_p3 = por %p417_p2, %p416_p1 }
  0x1f   : > { %p419_p5 = pnand %p418_p3, %p412_p0 }
  0x8f   : > { %v202_v13 = vpop.permute.xlu0 %201  ;;  %v212_v14 = vpop.permute.xlu1 %211 }
  0x90   : > { %v208_v18 = vmul.f32 %v207_v12, %v202_v13  ;;  %v218_v20 = vmul.f32 %v217_v15, %v212_v14 }
  0x93   : > { %v197_v19 = vpop.permute.xlu0 %196 }
  0x94   : > { %v209_v21 = vadd.f32 %v208_v18, %v197_v19  ;;  %v222_v22 = vpop.permute.xlu1 %221 }
  0x95   : > { %v228_v23 = vmul.f32 %v227_v16, %v222_v22 }
  0x96   : > { %v219_v25 = vadd.f32 %v218_v20, %v209_v21 }
  0x98   : > { %v229_v26 = vadd.f32 %v228_v23, %v219_v25  ;;  %v232_v27 = vpop.permute.xlu0 %231 }
  0x99   : > { %v238_v28 = vmul.f32 %v237_v24, %v232_v27 }
  0x9b   : > { %v239_v29 = vadd.f32 %v238_v28, %v229_v26 }
  0x9d   : > { %v241_v30 = vmul.f32 0.70710677, %v239_v29  ;;  %v240_v32 = vmul.f32 0.5, %v239_v29 }
  0x9f   : > { %407 = verf.f32 %v241_v30 }
  0xa9   : > { %v408_v31 = vpop.eup %407 }
  0xaa   : > { %v243_v33 = vadd.f32 1.0, %v408_v31 }
  0xac   : > { %v244_v34 = vmul.f32 %v243_v33, %v240_v32 }
  0xae   : > { %246 = vst.msk [vmem:[%s183_s11] sm:$0xff] %vm245_vm0, %v244_v34 }
  0xaf   : > { %422 = shalt.err (!%p419_p5)
}
  0xb0   : > { %s423_s30 = scalar_lea.hbm %s585_s23, 128  ;;  %s427_s6 = scalar_lea.hbm %s635_s3, 256 }
  0xb1   : > { %p424_p6 = scmp.ne.s32.totalorder %s585_s23, %s423_s30  ;;  %p428_p10 = scmp.lt.u32.totalorder %s585_s23, %s635_s3 }
  0xb2   : > { %p429_p11 = scmp.lt.u32.totalorder %s427_s6, %s423_s30  ;;  %p431_p13 = scmp.lt.u32.totalorder %s423_s30, %s585_s23 }
  0xb3   : > { %p425_p7 = pnand %p424_p6, %p554_p4 }
  0xb4   : > { %p430_p12 = por %p429_p11, %p428_p10 }
  0xb5   : > { %p426_p9 = pneg %p425_p7 }
  0xb6   : > { %p432_p0 = por %p431_p13, %p430_p12 }
  0xb8   : > { %p433_p1 = pnand %p432_p0, %p426_p9 }
  0xba   : > { %436 = shalt.err (!%p433_p1)
}
  0xbb   : > { %344 = dma.vmem_to_hbm [thread:$0]  (%p554_p4), %s587_s18, 128, %s585_s23, %s248_s26  }
  0xbc PF: > { %p350_p2 = scmp.ge.s32.totalorder %s487_s17, 2  ;;  %s274_s9 = sand.u32 1, %s467_s12  }
  0xbd   : > { %s275_s10 = scalar_lea.sflag [#allocation3], %s274_s9 }
  0xbe   : > { %p347_p3 = pnand %p350_p2, %p561_p8 }
  0xc0   : > { %462 = dma.done.wait (!%p347_p3), %s275_s10, 128  }
  0xc1   : > { %464 = vsyncadd (!%p347_p3), %s275_s10, 4294967168  ;;  %s16_s17 = sadd.s32 1, %s487_s17   ;;  %s638_s12 = smov %s471_s13 }
  0xc2   : > { %p13_p5 = scmp.ge.s32.totalorder %s16_s17, 4   ;;  %s639_s13 = smov %s475_s14 }
  0xc3   : > { %s640_s14 = smov %s567_s25  ;;  %s641_s15 = smov %s483_s16 }
  0xc4   : > { %s642_s16 = smov %s644_s20  ;;  %15 = sbr.rel (!%p13_p5) target bundleno = 4 (0x4), region = 67 }
  0xcb   :  { %280 = vsyncpa [#allocation3], 1 }
  0xcc   :  { %282 = vsyncpa [#allocation3 + $0x1], 1 }

</bundles_post_ra>
